<compile_context>
chip_gen: v7x
topology: tpu7x:2x2x1
jax: 0.10.0
libtpu: 0.0.40
codegen_flags: <defaults>
</compile_context>

<pallas_src>
import jax
import jax.numpy as jnp
from jax.experimental import pallas as pl
from jax.experimental.pallas import tpu as pltpu


def ppo_forward_kernel(s_ref, w1_ref, b1_ref, w2_ref, b2_ref,
                       w5_ref, wef_ref, b5_ref, log_std_ref, noise_ref,
                       action_ref):
    s = s_ref[...]

    # backbone[:-2] : Linear(D,H0) -> ReLU -> Linear(H0,H1)   (no trailing ReLU)
    z1 = jnp.maximum(
        jnp.dot(s, w1_ref[...], preferred_element_type=jnp.float32) + b1_ref[...], 0.0)
    h0 = jnp.dot(z1, w2_ref[...], preferred_element_type=jnp.float32) + b2_ref[...]

    # Folded head:  (h0 + relu(h0) @ we + be) @ w5 + b5
    #            ==  h0 @ w5 + relu(h0) @ (we @ w5) + (b5 + be @ w5)
    head = (jnp.dot(h0, w5_ref[...], preferred_element_type=jnp.float32)
            + jnp.dot(jnp.maximum(h0, 0.0), wef_ref[...],
                      preferred_element_type=jnp.float32)
            + b5_ref[...])
    mean = jnp.tanh(head)

    # Normal(mean, exp(log_std)).rsample() followed by tanh squash.
    action = jnp.tanh(mean + jnp.exp(log_std_ref[...]) * noise_ref[...])
    action_ref[...] = action.astype(action_ref.dtype)


def fold_and_pad_params(params, lane_pad=128):
    """One-time parameter prep: fold E_t[4] into the head and pad action dim to 128 lanes."""
    w1, b1, w2, b2, we, be, w5, b5, log_std = params
    A = w5.shape[1]
    AP = max(lane_pad, ((A + lane_pad - 1) // lane_pad) * lane_pad)
    wef = we @ w5                       # (H1, A)
    b5f = b5 + be @ w5                  # (1, A)
    pad_cols = lambda x: jnp.pad(x, ((0, 0), (0, AP - x.shape[1])))
    kparams = (w1, b1, w2, b2, pad_cols(w5), pad_cols(wef), pad_cols(b5f),
               pad_cols(log_std))
    return kparams, A, AP


def ppo_forward(s, kparams, noise, A, AP, batch_tile=128):
    """Runs PPO.forward. Returns (action, log_std) like the PyTorch module."""
    B, D = s.shape
    w1, b1, w2, b2, w5p, wefp, b5p, log_std_p = kparams
    H0 = w1.shape[1]
    H1 = w2.shape[1]
    noise_p = jnp.pad(noise, ((0, 0), (0, AP - noise.shape[1])))

    if B >= 2 * batch_tile and B % batch_tile == 0:
        # Batch-tiled path: grid over batch, weights VMEM-resident, batch axis parallel.
        Bt = batch_tile
        const = lambda shape: pl.BlockSpec(shape, lambda i: (0, 0))
        action_p = pl.pallas_call(
            ppo_forward_kernel,
            out_shape=jax.ShapeDtypeStruct((B, AP), jnp.float32),
            grid=(B // Bt,),
            in_specs=[
                pl.BlockSpec((Bt, D), lambda i: (i, 0)),     # s
                const((D, H0)), const((1, H0)),              # backbone[0]
                const((H0, H1)), const((1, H1)),             # backbone[2]
                const((H1, AP)), const((H1, AP)),            # head: w5, folded we@w5
                const((1, AP)), const((1, AP)),              # b5', log_std
                pl.BlockSpec((Bt, AP), lambda i: (i, 0)),    # noise (rsample eps)
            ],
            out_specs=pl.BlockSpec((Bt, AP), lambda i: (i, 0)),
            compiler_params=pltpu.CompilerParams(
                dimension_semantics=("parallel",)),
        )(s, w1, b1, w2, b2, w5p, wefp, b5p, log_std_p, noise_p)
    else:
        # Small batch: no grid, no pipelining — everything VMEM-resident in one shot.
        vmem = pl.BlockSpec(memory_space=pltpu.MemorySpace.VMEM)
        action_p = pl.pallas_call(
            ppo_forward_kernel,
            out_shape=jax.ShapeDtypeStruct((B, AP), jnp.float32),
            in_specs=[vmem] * 10,
            out_specs=vmem,
        )(s, w1, b1, w2, b2, w5p, wefp, b5p, log_std_p, noise_p)

    action = action_p[:, :A]
    log_std = log_std_p[0, :A]
    return action, log_std


def init_params(key, state_dim, h_dim, action_dim):
    """Deterministic PyTorch-Linear-style init (U(-1/sqrt(in), 1/sqrt(in)))."""
    def linear(key, in_f, out_f):
        kw, kb = jax.random.split(key)
        bound = 1.0 / jnp.sqrt(in_f)
        # weight stored pre-transposed: (in_features, out_features)
        w = jax.random.uniform(kw, (in_f, out_f), jnp.float32, -bound, bound)
        b = jax.random.uniform(kb, (1, out_f), jnp.float32, -bound, bound)
        return w, b

    k1, k2, k3, k4 = jax.random.split(key, 4)
    w1, b1 = linear(k1, state_dim, h_dim[0])     # backbone[0]
    w2, b2 = linear(k2, h_dim[0], h_dim[1])      # backbone[2]
    we, be = linear(k3, h_dim[1], h_dim[-1])     # E_t[4] (fresh linear)
    w5, b5 = linear(k4, h_dim[-1], action_dim)   # backbone[4]
    log_std = jnp.full((1, action_dim), -0.5, jnp.float32)
    return (w1, b1, w2, b2, we, be, w5, b5, log_std)


def reference_forward(s, params, noise):
    """Unfolded pure-JAX reference matching the PyTorch forward."""
    w1, b1, w2, b2, we, be, w5, b5, log_std = params
    z1 = jnp.maximum(s @ w1 + b1, 0.0)
    h0 = z1 @ w2 + b2
    ht = jnp.maximum(h0, 0.0) @ we + be
    feat = h0 + ht
    mean = jnp.tanh(feat @ w5 + b5)
    action = jnp.tanh(mean + jnp.exp(log_std) * noise)
    return action


if __name__ == "__main__":
    # Small shapes: state_dim=32 (pol.input_dim), h_dim=[32,32], action_dim=8.
    D, A = 32, 8
    h_dim = [32, 32]

    key = jax.random.PRNGKey(0)
    k_params, k_s, k_noise, k_s2, k_noise2 = jax.random.split(key, 5)

    params = init_params(k_params, D, h_dim, A)
    kparams, A_, AP = fold_and_pad_params(params)

    # --- small-batch (grid-less) path ---
    B = 8
    s = jax.random.normal(k_s, (B, D), jnp.float32)
    noise = jax.random.normal(k_noise, (B, A), jnp.float32)   # eps for dist.rsample()
    action, log_std = ppo_forward(s, kparams, noise, A_, AP)
    jax.block_until_ready((action, log_std))
    ref_action = reference_forward(s, params, noise)
    # atol relaxed slightly: the we@w5 fold reassociates the f32 head reduction.
    assert jnp.allclose(action, ref_action, atol=1e-4, rtol=1e-4)
    assert log_std.shape == (A,)
    assert jnp.allclose(log_std, params[-1][0], atol=0.0)

    # --- batch-tiled ("parallel") path ---
    B2 = 256
    s2 = jax.random.normal(k_s2, (B2, D), jnp.float32)
    noise2 = jax.random.normal(k_noise2, (B2, A), jnp.float32)
    action2, log_std2 = ppo_forward(s2, kparams, noise2, A_, AP)
    jax.block_until_ready((action2, log_std2))
    ref_action2 = reference_forward(s2, params, noise2)
    assert jnp.allclose(action2, ref_action2, atol=1e-4, rtol=1e-4)

    print("KERNEL_OK")
</pallas_src>

<mosaic_0001>
module attributes {stable_mosaic.version = 11 : i64} {
  func.func @ppo_forward_kernel(%arg0: memref<8x32xf32, #tpu.memory_space<vmem>>, %arg1: memref<32x32xf32, #tpu.memory_space<vmem>>, %arg2: memref<1x32xf32, #tpu.memory_space<vmem>>, %arg3: memref<32x32xf32, #tpu.memory_space<vmem>>, %arg4: memref<1x32xf32, #tpu.memory_space<vmem>>, %arg5: memref<32x128xf32, #tpu.memory_space<vmem>>, %arg6: memref<32x128xf32, #tpu.memory_space<vmem>>, %arg7: memref<1x128xf32, #tpu.memory_space<vmem>>, %arg8: memref<1x128xf32, #tpu.memory_space<vmem>>, %arg9: memref<8x128xf32, #tpu.memory_space<vmem>>, %arg10: memref<8x128xf32, #tpu.memory_space<vmem>>) attributes {dimension_semantics = [], scalar_prefetch = 0 : i64, scratch_operands = 0 : i64, tpu.core_type = #tpu.core_type<tc>} {
    %c0 = arith.constant 0 : index
    %c0_0 = arith.constant 0 : index
    %0 = vector.load %arg0[%c0, %c0_0] : memref<8x32xf32, #tpu.memory_space<vmem>>, vector<8x32xf32>
    %c0_1 = arith.constant 0 : index
    %c0_2 = arith.constant 0 : index
    %1 = vector.load %arg1[%c0_1, %c0_2] : memref<32x32xf32, #tpu.memory_space<vmem>>, vector<32x32xf32>
    %cst = arith.constant dense<0.000000e+00> : vector<8x32xf32>
    %2 = tpu.matmul %0, %1, %cst {dimension_numbers = #tpu.dot_dimension_numbers<[1], [0], [0], [1], [0, 0, 1, 1], [], []>} : vector<8x32xf32>, vector<32x32xf32>, vector<8x32xf32> -> vector<8x32xf32>
    %c0_3 = arith.constant 0 : index
    %c0_4 = arith.constant 0 : index
    %3 = vector.load %arg2[%c0_3, %c0_4] : memref<1x32xf32, #tpu.memory_space<vmem>>, vector<1x32xf32>
    %4 = vector.broadcast %3 : vector<1x32xf32> to vector<8x32xf32>
    %5 = arith.addf %2, %4 : vector<8x32xf32>
    %cst_5 = arith.constant 0.000000e+00 : f32
    %6 = vector.broadcast %cst_5 : f32 to vector<8x32xf32>
    %7 = arith.maximumf %5, %6 : vector<8x32xf32>
    %c0_6 = arith.constant 0 : index
    %c0_7 = arith.constant 0 : index
    %8 = vector.load %arg3[%c0_6, %c0_7] : memref<32x32xf32, #tpu.memory_space<vmem>>, vector<32x32xf32>
    %cst_8 = arith.constant dense<0.000000e+00> : vector<8x32xf32>
    %9 = tpu.matmul %7, %8, %cst_8 {dimension_numbers = #tpu.dot_dimension_numbers<[1], [0], [0], [1], [0, 0, 1, 1], [], []>} : vector<8x32xf32>, vector<32x32xf32>, vector<8x32xf32> -> vector<8x32xf32>
    %c0_9 = arith.constant 0 : index
    %c0_10 = arith.constant 0 : index
    %10 = vector.load %arg4[%c0_9, %c0_10] : memref<1x32xf32, #tpu.memory_space<vmem>>, vector<1x32xf32>
    %11 = vector.broadcast %10 : vector<1x32xf32> to vector<8x32xf32>
    %12 = arith.addf %9, %11 : vector<8x32xf32>
    %c0_11 = arith.constant 0 : index
    %c0_12 = arith.constant 0 : index
    %13 = vector.load %arg5[%c0_11, %c0_12] : memref<32x128xf32, #tpu.memory_space<vmem>>, vector<32x128xf32>
    %cst_13 = arith.constant dense<0.000000e+00> : vector<8x128xf32>
    %14 = tpu.matmul %12, %13, %cst_13 {dimension_numbers = #tpu.dot_dimension_numbers<[1], [0], [0], [1], [0, 0, 1, 1], [], []>} : vector<8x32xf32>, vector<32x128xf32>, vector<8x128xf32> -> vector<8x128xf32>
    %cst_14 = arith.constant 0.000000e+00 : f32
    %15 = vector.broadcast %cst_14 : f32 to vector<8x32xf32>
    %16 = arith.maximumf %12, %15 : vector<8x32xf32>
    %c0_15 = arith.constant 0 : index
    %c0_16 = arith.constant 0 : index
    %17 = vector.load %arg6[%c0_15, %c0_16] : memref<32x128xf32, #tpu.memory_space<vmem>>, vector<32x128xf32>
    %cst_17 = arith.constant dense<0.000000e+00> : vector<8x128xf32>
    %18 = tpu.matmul %16, %17, %cst_17 {dimension_numbers = #tpu.dot_dimension_numbers<[1], [0], [0], [1], [0, 0, 1, 1], [], []>} : vector<8x32xf32>, vector<32x128xf32>, vector<8x128xf32> -> vector<8x128xf32>
    %19 = arith.addf %14, %18 : vector<8x128xf32>
    %c0_18 = arith.constant 0 : index
    %c0_19 = arith.constant 0 : index
    %20 = vector.load %arg7[%c0_18, %c0_19] : memref<1x128xf32, #tpu.memory_space<vmem>>, vector<1x128xf32>
    %21 = vector.broadcast %20 : vector<1x128xf32> to vector<8x128xf32>
    %22 = arith.addf %19, %21 : vector<8x128xf32>
    %23 = math.tanh %22 : vector<8x128xf32>
    %c0_20 = arith.constant 0 : index
    %c0_21 = arith.constant 0 : index
    %24 = vector.load %arg8[%c0_20, %c0_21] : memref<1x128xf32, #tpu.memory_space<vmem>>, vector<1x128xf32>
    %25 = math.exp %24 : vector<1x128xf32>
    %c0_22 = arith.constant 0 : index
    %c0_23 = arith.constant 0 : index
    %26 = vector.load %arg9[%c0_22, %c0_23] : memref<8x128xf32, #tpu.memory_space<vmem>>, vector<8x128xf32>
    %27 = vector.broadcast %25 : vector<1x128xf32> to vector<8x128xf32>
    %28 = arith.mulf %27, %26 : vector<8x128xf32>
    %29 = arith.addf %23, %28 : vector<8x128xf32>
    %30 = math.tanh %29 : vector<8x128xf32>
    %c0_24 = arith.constant 0 : index
    %c0_25 = arith.constant 0 : index
    %31 = vector.load %arg10[%c0_24, %c0_25] : memref<8x128xf32, #tpu.memory_space<vmem>>, vector<8x128xf32>
    tpu.vector_store %arg10[%c0_24, %c0_25], %30 {strides = array<i32>} : memref<8x128xf32, #tpu.memory_space<vmem>>, vector<8x128xf32>,
    return
  }
}

</mosaic_0001>

<bundles_post_ra>
// kernel: tpu_custom_call.1
= control target key start
LH: loop header
LB: loop body
LE: loop exit
PB: predicated region body
PF: predicated region fallthrough
CT: control target
= control target key end

     0   :  { %15 = vsyncpa [#allocation3], 0  ;;  %s893_s0 = inlined_call_operand.hbm [shape: f32[8,32], index: 0, kind: input, shape index: {}]   ;;  %s894_s1 = inlined_call_operand.hbm [shape: f32[32,32], index: 1, kind: input, shape index: {}]   ;;  %s895_s2 = inlined_call_operand.vmem [shape: f32[1,32], index: 2, kind: input, shape index: {}]   ;;  %s896_s3 = inlined_call_operand.hbm [shape: f32[32,32], index: 3, kind: input, shape index: {}]   ;;  %s897_s4 = inlined_call_operand.vmem [shape: f32[1,32], index: 4, kind: input, shape index: {}]   ;;  %s898_s5 = inlined_call_operand.hbm [shape: f32[32,128], index: 5, kind: input, shape index: {}]   ;;  %s899_s6 = inlined_call_operand.hbm [shape: f32[32,128], index: 6, kind: input, shape index: {}]   ;;  %s900_s7 = inlined_call_operand.vmem [shape: f32[1,128], index: 7, kind: input, shape index: {}]   ;;  %s901_s8 = inlined_call_operand.vmem [shape: f32[1,128], index: 8, kind: input, shape index: {}]   ;;  %s902_s9 = inlined_call_operand.vmem [shape: f32[8,128], index: 9, kind: input, shape index: {}]   ;;  %s903_s10 = inlined_call_operand.hbm [shape: f32[8,128], index: 10, kind: output, shape index: {}]  }
   0x1   :  { %16 = vsyncpa [#allocation6], 0 }
   0x2   :  { %17 = vsyncpa [#allocation9], 0 }
   0x3   :  { %18 = vsyncpa [#allocation4], 0  ;;  %s720_s13 = smov [#allocation5]   ;;  %s580_s17 = scalar_lea.hbm %s894_s1, 512 }
   0x4   :  { %s34_s14 = sshll.u32 %s720_s13, 4  ;;  %p581_p0 = scmp.ne.s32.totalorder %s894_s1, %s580_s17  ;;  %s35_s14 = int_to_ptr.vmem [resolvable:$true] %s34_s14 }
   0x5   :  { %p584_p1 = scmp.lt.u32.totalorder %s580_s17, %s894_s1 }
   0x7   :  { %p586_p2 = pnand %p584_p1, %p581_p0 }
   0x9   :  { %589 = shalt.err (!%p586_p2)
}
   0xa   :  { %s590_s22 = scalar_lea.vmem %s35_s14, 512  ;;  %p595_p4 = scmp.lt.s32.totalorder %s35_s14, %s35_s14 }
   0xb   :  { %p591_p3 = scmp.ne.s32.totalorder %s35_s14, %s590_s22  ;;  %p596_p5 = scmp.lt.s32.totalorder %s590_s22, %s590_s22 }
   0xd   :  { %p597_p6 = por %p596_p5, %p595_p4 }
   0xf   :  { %p598_p7 = pnand %p597_p6, %p591_p3 }
  0x11   :  { %601 = shalt.err (!%p598_p7)
}
  0x12   :  { %s721_s23 = smov 128   ;;  %s722_s24 = smov 8  }
  0x13   :  { %40 = dma.hbm_to_vmem [thread:$0]  %s894_s1, 512, %s35_s14, [#allocation6], %s721_s23, %s721_s23, %s722_s24  }
  0x14   :  { %s723_s27 = smov [#allocation8]   ;;  %s724_s29 = smov [#allocation2]  }
  0x15   :  { %s62_s28 = sshll.u32 %s723_s27, 4  ;;  %s25_s30 = sshll.u32 %s724_s29, 4  ;;  %s63_s28 = int_to_ptr.vmem [resolvable:$true] %s62_s28  ;;  %s26_s30 = int_to_ptr.vmem [resolvable:$true] %s25_s30 }
  0x16   :  { %s602_s13 = scalar_lea.hbm %s898_s5, 512 }
  0x17   :  { %p603_p8 = scmp.ne.s32.totalorder %s898_s5, %s602_s13  ;;  %p606_p9 = scmp.lt.u32.totalorder %s602_s13, %s898_s5 }
  0x19   :  { %p608_p10 = pnand %p606_p9, %p603_p8 }
  0x1b   :  { %611 = shalt.err (!%p608_p10)
}
  0x1c   :  { %s612_s1 = scalar_lea.vmem %s63_s28, 512  ;;  %p617_p12 = scmp.lt.s32.totalorder %s63_s28, %s63_s28 }
  0x1d   :  { %p613_p11 = scmp.ne.s32.totalorder %s63_s28, %s612_s1  ;;  %p618_p13 = scmp.lt.s32.totalorder %s612_s1, %s612_s1 }
  0x1f   :  { %p619_p0 = por %p618_p13, %p617_p12 }
  0x21   :  { %p620_p1 = pnand %p619_p0, %p613_p11 }
  0x23   :  { %623 = shalt.err (!%p620_p1)
}
  0x24   :  { %68 = dma.hbm_to_vmem [thread:$0]  %s898_s5, 512, %s63_s28, [#allocation9], %s721_s23, %s721_s23, %s722_s24  }
  0x25   :  { %s624_s22 = scalar_lea.hbm %s893_s0, 128 }
  0x26   :  { %p625_p2 = scmp.ne.s32.totalorder %s893_s0, %s624_s22  ;;  %p628_p3 = scmp.lt.u32.totalorder %s624_s22, %s893_s0 }
  0x28   :  { %p630_p4 = pnand %p628_p3, %p625_p2 }
  0x2a   :  { %633 = shalt.err (!%p630_p4)
}
  0x2b   :  { %s634_s11 = scalar_lea.vmem %s26_s30, 128  ;;  %p639_p6 = scmp.lt.s32.totalorder %s26_s30, %s26_s30 }
  0x2c   :  { %p635_p5 = scmp.ne.s32.totalorder %s26_s30, %s634_s11  ;;  %p640_p7 = scmp.lt.s32.totalorder %s634_s11, %s634_s11 }
  0x2e   :  { %p641_p8 = por %p640_p7, %p639_p6 }
  0x30   :  { %p642_p9 = pnand %p641_p8, %p635_p5 }
  0x32   :  { %645 = shalt.err (!%p642_p9)
}
  0x33   :  { %28 = dma.hbm_to_vmem [thread:$0]  %s893_s0, 128, %s26_s30, [#allocation3]  }
  0x34   :  { %s725_s12 = smov [#allocation7]   ;;  %s726_s15 = smov [#allocation10]  }
  0x35   :  { %s48_s13 = sshll.u32 %s725_s12, 4  ;;  %s74_s16 = sshll.u32 %s726_s15, 4  ;;  %s49_s13 = int_to_ptr.vmem [resolvable:$true] %s48_s13  ;;  %s75_s16 = int_to_ptr.vmem [resolvable:$true] %s74_s16 }
  0x36   :  { %s646_s1 = scalar_lea.hbm %s896_s3, 512 }
  0x37   :  { %p647_p10 = scmp.ne.s32.totalorder %s896_s3, %s646_s1  ;;  %p650_p11 = scmp.lt.u32.totalorder %s646_s1, %s896_s3 }
  0x39   :  { %p652_p12 = pnand %p650_p11, %p647_p10 }
  0x3b   :  { %655 = shalt.err (!%p652_p12)
}
  0x3c   :  { %s656_s0 = scalar_lea.vmem %s49_s13, 512  ;;  %p661_p0 = scmp.lt.s32.totalorder %s49_s13, %s49_s13 }
  0x3d   :  { %p657_p13 = scmp.ne.s32.totalorder %s49_s13, %s656_s0  ;;  %p662_p1 = scmp.lt.s32.totalorder %s656_s0, %s656_s0 }
  0x3f   :  { %p663_p2 = por %p662_p1, %p661_p0 }
  0x41   :  { %p664_p3 = pnand %p663_p2, %p657_p13 }
  0x43   :  { %667 = shalt.err (!%p664_p3)
}
  0x44   :  { %54 = dma.hbm_to_vmem [thread:$0]  %s896_s3, 512, %s49_s13, [#allocation6], %s721_s23, %s721_s23, %s722_s24  }
  0x45   :  { %s668_s27 = scalar_lea.hbm %s899_s6, 512 }
  0x46   :  { %p669_p4 = scmp.ne.s32.totalorder %s899_s6, %s668_s27  ;;  %p672_p5 = scmp.lt.u32.totalorder %s668_s27, %s899_s6 }
  0x48   :  { %p674_p6 = pnand %p672_p5, %p669_p4 }
  0x4a   :  { %677 = shalt.err (!%p674_p6)
}
  0x4b   :  { %s678_s12 = scalar_lea.vmem %s75_s16, 512  ;;  %p683_p8 = scmp.lt.s32.totalorder %s75_s16, %s75_s16 }
  0x4c   :  { %p679_p7 = scmp.ne.s32.totalorder %s75_s16, %s678_s12  ;;  %p684_p9 = scmp.lt.s32.totalorder %s678_s12, %s678_s12 }
  0x4e   :  { %p685_p10 = por %p684_p9, %p683_p8 }
  0x50   :  { %p686_p11 = pnand %p685_p10, %p679_p7 }
  0x52   :  { %689 = shalt.err (!%p686_p11)
}
  0x53   :  { %80 = dma.hbm_to_vmem [thread:$0]  %s899_s6, 512, %s75_s16, [#allocation9], %s721_s23, %s721_s23, %s722_s24  }
  0x54   :  { %712 = dma.done.wait [#allocation3], 128  }
  0x55   :  { %713 = vsyncadd [#allocation3], 4294967168 }
  0x56   :  { %714 = dma.done.wait [#allocation6], 1024  }
  0x57   :  { %715 = vsyncadd [#allocation6], 4294966272 }
  0x58   :  { %716 = dma.done.wait [#allocation9], 1024  }
  0x59   :  { %717 = vsyncadd [#allocation9], 4294966272  ;;  %v727_v0 = vmov 0.0|0.0   ;;  %vm728_vm0 = vmmov 0   ;;  %v729_v1 = vmov 0.0   ;;  %v103_v2 = vld [vmem:[#allocation5] sm:$0xff]  ;;  %v442_v39 = vlaneseq }
  0x5a   :  { %539 = vmatprep.subr.bf16.mxu0 %v727_v0  ;;  %503 = vmatprep.mubr.msk.f32.mxu0 %vm728_vm0, %v729_v1  ;;  %v104_v3 = vld [vmem:[#allocation5 + $0x8] sm:$0xff]  ;;  %v105_v4 = vld [vmem:[#allocation5 + $0x10] sm:$0xff]  ;;  %v106_v6 = vld [vmem:[#allocation5 + $0x18] sm:$0xff]  ;;  %vm114_vm1 = vcmask 261120   ;;  %s730_s1 = smov [#allocation11]  }
  0x5b   :  { %545 = vmatprep.subr.bf16.mxu1 %v727_v0  ;;  %514 = vmatprep.mubr.msk.f32.mxu1 %vm728_vm0, %v729_v1  ;;  %v540_v5 = vpack.c.bf16 %v104_v3, %v103_v2  ;;  %v189_v7 = vld [vmem:[#allocation7] sm:$0xff]  ;;  %v190_v8 = vld [vmem:[#allocation7 + $0x8] sm:$0xff]  ;;  %v543_v9 = vpack.c.bf16 %v106_v6, %v105_v4  ;;  %v102_v11 = vld [vmem:[#allocation2] sm:$0xff]  ;;  %v443_v44 = vshrl.u32 %v442_v39, 7  ;;  %s457_s14 = sshll.u32 %s730_s1, 4  ;;  %s458_s14 = int_to_ptr.vmem [resolvable:$true] %s457_s14 }
  0x5c   :  { %v546_v10 = vpack.c.bf16 %v190_v8, %v189_v7  ;;  %v191_v12 = vld [vmem:[#allocation7 + $0x10] sm:$0xff]  ;;  %v192_v13 = vld [vmem:[#allocation7 + $0x18] sm:$0xff]  ;;  %v278_v15 = vld [vmem:[#allocation10] sm:$0xff]  ;;  %p695_p13 = scmp.lt.s32.totalorder %s458_s14, %s458_s14 }
  0x5d   :  { %541 = vmatpush3.bf16.msra.mxu0 %v540_v5  ;;  %v549_v14 = vpack.c.bf16 %v192_v13, %v191_v12  ;;  %v279_v16 = vld [vmem:[#allocation10 + $0x8] sm:$0xff]  ;;  %v468_v18 = vld [vmem:[%s895_s2] ss:$0 sm:$0xff]  ;;  %v273_v19 = vld [vmem:[#allocation8] sm:$0xff]  ;;  %v444_v48 = vsub.s32 0, %v443_v44 }
  0x5e   :  { %542 = vmatprep.subr.bf16.mxu0 %v727_v0  ;;  %547 = vmatpush3.bf16.msra.mxu1 %v546_v10  ;;  %v552_v17 = vpack.c.bf16 %v279_v16, %v278_v15  ;;  %v274_v20 = vld [vmem:[#allocation8 + $0x8] sm:$0xff]  ;;  %v275_v26 = vld [vmem:[#allocation8 + $0x10] sm:$0xff]  ;;  %v276_v27 = vld [vmem:[#allocation8 + $0x18] sm:$0xff] }
  0x5f   :  { %548 = vmatprep.subr.bf16.mxu1 %v727_v0  ;;  %v558_v24 = vpack.c.bf16 %v274_v20, %v273_v19  ;;  %v561_v28 = vpack.c.bf16 %v276_v27, %v275_v26  ;;  %v280_v29 = vld [vmem:[#allocation10 + $0x10] sm:$0xff]  ;;  %v281_v30 = vld [vmem:[#allocation10 + $0x18] sm:$0xff] }
  0x60   :  { %v555_v31 = vpack.c.bf16 %v281_v30, %v280_v29  ;;  %v470_v32 = vld [vmem:[%s897_s4] ss:$0 sm:$0xff] }
  0x61   :  { %544 = vmatpush3.bf16.msra.mxu0 %v543_v9  ;;  %v437_v37 = vld [vmem:[%s901_s8] sm:$0x1] }
  0x62   :  { %551 = vmatprep.subr.bf16.mxu0 %v727_v0  ;;  %550 = vmatpush3.bf16.msra.mxu1 %v549_v14  ;;  %v438_v38 = vmul.f32 1.442695, %v437_v37  ;;  %v474_v43 = vld [vmem:[%s900_s7] ss:$0 sm:$0xff]  ;;  %s690_s7 = scalar_lea.vmem %s458_s14, 128 }
  0x63   :  { %557 = vmatprep.subr.bf16.mxu1 %v727_v0  ;;  %v440_v51 = vld [vmem:[%s902_s9] sm:$0xff]  ;;  %p691_p12 = scmp.ne.s32.totalorder %s458_s14, %s690_s7  ;;  %p696_p0 = scmp.lt.s32.totalorder %s690_s7, %s690_s7 }
  0x64   :  { %504 = vmatmul.mubr.msk.f32.vlgmr.msra.gmra.mrb[0].mxu0 %vm114_vm1, %v102_v11  ;;  %574 = vpow2.f32 %v438_v38 }
  0x65   :  { %525 = vmatprep.mubr.msk.f32.mxu0 %vm728_vm0, %v729_v1  ;;  %553 = vmatpush3.bf16.msra.mxu0 %v552_v17  ;;  %p697_p1 = por %p696_p0, %p695_p13 }
  0x66   :  { %554 = vmatprep.subr.bf16.mxu0 %v727_v0 }
  0x67   :  { %p698_p2 = pnand %p697_p1, %p691_p12 }
  0x69   :  { %556 = vmatpush3.bf16.msra.mxu0 %v555_v31 }
  0x6e   :  { %v575_v49 = vpop.eup %574 }
  0x6f   :  { %v445_v50 = vrot.slane %v575_v49, %v444_v48 }
  0x71   :  { %v447_v52 = vmul.f32 %v445_v50, %v440_v51 }
 0x137   :  { %v184_v21 = vpop.f32.mrb[0].mxu0 }
 0x138   :  { %v185_v22 = vadd.f32 %v468_v18, %v184_v21  ;;  %v505_v23 = vpop.f32.mrb[1].mxu0 }
 0x13a   :  { %v188_v25 = vmax.f32 %v185_v22, 0.0 }
 0x13c   :  { %515 = vmatmul.mubr.msk.f32.vlgmr.msra.gmra.mrb[0].mxu1 %vm114_vm1, %v188_v25 }
 0x13d   :  { %559 = vmatpush3.bf16.msra.mxu1 %v558_v24  ;;  %536 = vmatprep.mubr.msk.f32.mxu1 %vm728_vm0, %v729_v1 }
 0x13e   :  { %560 = vmatprep.subr.bf16.mxu1 %v727_v0 }
 0x141   :  { %562 = vmatpush3.bf16.msra.mxu1 %v561_v28 }
 0x20f   :  { %v269_v33 = vpop.f32.mrb[0].mxu1 }
 0x210   :  { %v270_v34 = vadd.f32 %v470_v32, %v269_v33  ;;  %v516_v35 = vpop.f32.mrb[1].mxu1 }
 0x212   :  { %v277_v36 = vmax.f32 %v270_v34, 0.0  ;;  %537 = vmatmul.mubr.msk.f32.vlgmr.msra.gmra.mrb[2].mxu1 %vm114_vm1, %v270_v34 }
 0x214   :  { %526 = vmatmul.mubr.msk.f32.vlgmr.msra.gmra.mrb[2].mxu0 %vm114_vm1, %v277_v36 }
 0x2e5   :  { %v424_v40 = vpop.f32.mrb[2].mxu1 }
 0x2e6   :  { %v538_v41 = vpop.f32.mrb[3].mxu1 }
 0x2e7   :  { %v351_v42 = vpop.f32.mrb[2].mxu0 }
 0x2e8   :  { %v425_v45 = vadd.f32 %v424_v40, %v351_v42  ;;  %v527_v46 = vpop.f32.mrb[3].mxu0 }
 0x2ea   :  { %v435_v47 = vadd.f32 %v474_v43, %v425_v45 }
 0x2ec   :  { %576 = vtanh.f32 %v435_v47 }
 0x2f6   :  { %v577_v53 = vpop.eup %576 }
 0x2f7   :  { %v448_v54 = vadd.f32 %v577_v53, %v447_v52 }
 0x2f9   :  { %578 = vtanh.f32 %v448_v54 }
 0x303   :  { %v579_v55 = vpop.eup %578 }
 0x304   :  { %450 = vst [vmem:[#allocation11] sm:$0xff] %v579_v55 }
 0x305   :  { %701 = shalt.err (!%p698_p2)
}
 0x306   :  { %s702_s9 = scalar_lea.hbm %s903_s10, 128 }
 0x307   :  { %p703_p3 = scmp.ne.s32.totalorder %s903_s10, %s702_s9  ;;  %p706_p4 = scmp.lt.u32.totalorder %s702_s9, %s903_s10 }
 0x309   :  { %p708_p5 = pnand %p706_p4, %p703_p3 }
 0x30b   :  { %711 = shalt.err (!%p708_p5)
}
 0x30c   :  { %460 = dma.vmem_to_hbm [thread:$0]  %s458_s14, 128, %s903_s10, [#allocation4]  }
 0x30d   :  { %718 = dma.done.wait [#allocation4], 128  }
 0x30e   :  { %719 = vsyncadd [#allocation4], 4294967168 }
 0x30f   :  { %464 = vsyncpa [#allocation3], 1 }
 0x310   :  { %465 = vsyncpa [#allocation6], 1 }
 0x311   :  { %466 = vsyncpa [#allocation9], 1 }
 0x312   :  { %467 = vsyncpa [#allocation4], 1 }

</bundles_post_ra>
